<compile_context>
chip_gen: v5e
topology: v5e:2x2
jax: 0.10.0
libtpu: 0.0.40
codegen_flags: <defaults>
</compile_context>

<pallas_src>
import jax
import jax.numpy as jnp
from jax.experimental import pallas as pl
from jax.experimental.pallas import tpu as pltpu  # noqa: F401  (kept for TPU-specific tuning)

# ----------------------- small synthetic shapes -----------------------------
N, CIN, H, W = 2, 3, 16, 16          # images: [N, CIN, H, W] (PyTorch NCHW)
KH, KW, STRIDE = 3, 3, 2             # inception stem conv: 3x3 / stride 2 / valid
CFEAT = 64                           # stand-in for inception fc.in_features (2048)
EMBED = 32                           # embedSize
HOUT = (H - KH) // STRIDE + 1        # 7
WOUT = (W - KW) // STRIDE + 1        # 7
S2D = H // STRIDE                    # 8   space-to-depth grid (per image)
KTAP = STRIDE * STRIDE * CIN         # 12  per-tap contraction depth
NPAD = 8                             # batch rows padded to a sublane multiple
MPAD = N * S2D * S2D                 # 128 conv rows (sublane/lane aligned)
CPAD = 128                           # CFEAT padded lane-dense
EPAD = 128                           # EMBED padded lane-dense
DROP_P = 0.5


# ------------------------------ fused kernel --------------------------------
def encoder_kernel(x_ref, wconv_ref, bconv_ref, pool_ref, wfc_ref, bfc_ref,
                   bits_ref, o_ref):
    """conv(3x3/s2) + folded-BN bias + ReLU + GAP + fc + ReLU + dropout.

    x:     (N, S2D+1, S2D+1, KTAP)   space-to-depth input, zero border
    wconv: (4, KTAP, CPAD)           per-tap conv weights (zero-padded channels)
    bconv: (1, CPAD)                 folded BN bias
    pool:  (NPAD, MPAD)              GAP matrix (1/49 on valid rows, else 0)
    wfc:   (CPAD, EPAD)   bfc: (1, EPAD)
    bits:  (NPAD, EPAD) uint32       dropout random bits
    out:   (NPAD, EPAD) f32
    """
    x = x_ref[...]                                     # (N, 9, 9, 12) in VMEM
    acc = jnp.zeros((MPAD, CPAD), jnp.float32)
    # 3x3/s2 conv == 4 shifted matmuls over the space-to-depth layout.
    for t, (di, dj) in enumerate(((0, 0), (0, 1), (1, 0), (1, 1))):
        tap = x[:, di:di + S2D, dj:dj + S2D, :].reshape(MPAD, KTAP)
        acc = acc + jnp.dot(tap, wconv_ref[t],
                            preferred_element_type=jnp.float32)
    conv = jnp.maximum(acc + bconv_ref[...], 0.0)      # (MPAD, CPAD)

    # Global average pool as an MXU matmul (also masks padded spatial rows).
    pooled = jnp.dot(pool_ref[...], conv, preferred_element_type=jnp.float32)

    # fc -> ReLU
    feats = jnp.dot(pooled, wfc_ref[...],
                    preferred_element_type=jnp.float32) + bfc_ref[...]
    act = jnp.maximum(feats, 0.0)

    # Dropout(0.5), training semantics: full 32-bit threshold, single fused where.
    keep = bits_ref[...] < jnp.uint32(0x80000000)
    o_ref[...] = jnp.where(keep, act * (1.0 / (1.0 - DROP_P)), 0.0)


# ------------------------------ wrappers (glue) ------------------------------
def _space_to_depth(images_nchw):
    """NCHW -> NHWC -> (N, S2D, S2D, 2*2*CIN) with a zero border (1x traffic)."""
    x = jnp.transpose(images_nchw, (0, 2, 3, 1)).astype(jnp.float32)
    x = x.reshape(N, S2D, STRIDE, S2D, STRIDE, CIN)
    x = jnp.transpose(x, (0, 1, 3, 2, 4, 5)).reshape(N, S2D, S2D, KTAP)
    return jnp.pad(x, ((0, 0), (0, 1), (0, 1), (0, 0)))   # (N, 9, 9, 12)


def _prep_params(params):
    """Scatter 3x3 taps into the 2x2 space-to-depth weight layout; pad lanes."""
    w4 = jnp.zeros((STRIDE, STRIDE, STRIDE, STRIDE, CIN, CFEAT), jnp.float32)
    for kh in range(KH):
        for kw in range(KW):
            w4 = w4.at[kh // 2, kw // 2, kh % 2, kw % 2].set(
                params["w_conv"][kh, kw])
    w_s2d = w4.reshape(STRIDE * STRIDE, KTAP, CFEAT)
    w_s2d = jnp.pad(w_s2d, ((0, 0), (0, 0), (0, CPAD - CFEAT)))
    b_conv = jnp.pad(params["b_conv"], ((0, 0), (0, CPAD - CFEAT)))
    w_fc = jnp.pad(params["w_fc"], ((0, CPAD - CFEAT), (0, EPAD - EMBED)))
    b_fc = jnp.pad(params["b_fc"], ((0, 0), (0, EPAD - EMBED)))
    return w_s2d, b_conv, w_fc, b_fc


def _pool_matrix():
    """(NPAD, MPAD): 1/(HOUT*WOUT) on valid (image, i<7, j<7) rows, else 0."""
    n = jnp.arange(NPAD)[:, None]
    m = jnp.arange(MPAD)[None, :]
    m_n = m // (S2D * S2D)
    m_a = (m // S2D) % S2D
    m_b = m % S2D
    valid = (m_n == n) & (m_a < HOUT) & (m_b < WOUT) & (n < N)
    return jnp.where(valid, 1.0 / (HOUT * WOUT), 0.0).astype(jnp.float32)


@jax.jit
def encoder_cnn_forward(images_nchw, params, dropout_key):
    x_s2d = _space_to_depth(images_nchw)
    w_s2d, b_conv, w_fc, b_fc = _prep_params(params)
    pool = _pool_matrix()
    # TODO(synk): training-mode dropout (matches nn.Dropout in train()); gate on
    # a training flag for inference use.
    bits = jax.random.bits(dropout_key, (NPAD, EPAD), dtype=jnp.uint32)

    out = pl.pallas_call(
        encoder_kernel,
        out_shape=jax.ShapeDtypeStruct((NPAD, EPAD), jnp.float32),
        # No grid / BlockSpecs: everything fits in a single VMEM-resident block,
        # so we skip per-step pipeline bookkeeping entirely.
    )(x_s2d, w_s2d, b_conv, pool, w_fc, b_fc, bits)
    return out[:N, :EMBED]


def init_params(key):
    k1, k2, k3, k4 = jax.random.split(key, 4)
    # conv weight in (KH, KW, CIN, CFEAT) tap order; bias = folded BN bias
    w_conv = jax.random.normal(k1, (KH, KW, CIN, CFEAT), jnp.float32) * 0.05
    b_conv = jax.random.normal(k2, (1, CFEAT), jnp.float32) * 0.01
    w_fc = jax.random.normal(k3, (CFEAT, EMBED), jnp.float32) * 0.05
    b_fc = jax.random.normal(k4, (1, EMBED), jnp.float32) * 0.01
    return {"w_conv": w_conv, "b_conv": b_conv, "w_fc": w_fc, "b_fc": b_fc}


if __name__ == "__main__":
    key = jax.random.PRNGKey(0)
    pkey, xkey, dkey = jax.random.split(key, 3)
    params = init_params(pkey)

    images = jax.random.normal(xkey, (N, CIN, H, W), jnp.float32)   # NCHW

    out = encoder_cnn_forward(images, params, dkey)
    out = jax.block_until_ready(out)

    assert out.shape == (N, EMBED), out.shape
    assert out.dtype == jnp.float32
    print("KERNEL_OK")
</pallas_src>

<mosaic_0001>
module attributes {stable_mosaic.version = 11 : i64} {
  func.func @encoder_kernel(%arg0: memref<2x9x9x12xf32, #tpu.memory_space<vmem>>, %arg1: memref<4x12x128xf32, #tpu.memory_space<vmem>>, %arg2: memref<1x128xf32, #tpu.memory_space<vmem>>, %arg3: memref<8x128xf32, #tpu.memory_space<vmem>>, %arg4: memref<128x128xf32, #tpu.memory_space<vmem>>, %arg5: memref<1x128xf32, #tpu.memory_space<vmem>>, %arg6: memref<8x128xi32, #tpu.memory_space<vmem>>, %arg7: memref<8x128xf32, #tpu.memory_space<vmem>>) attributes {dimension_semantics = [], scalar_prefetch = 0 : i64, scratch_operands = 0 : i64, tpu.core_type = #tpu.core_type<tc>} {
    %c0 = arith.constant 0 : index
    %c0_0 = arith.constant 0 : index
    %c0_1 = arith.constant 0 : index
    %c0_2 = arith.constant 0 : index
    %0 = vector.load %arg0[%c0, %c0_0, %c0_1, %c0_2] : memref<2x9x9x12xf32, #tpu.memory_space<vmem>>, vector<2x9x9x12xf32>
    %cst = arith.constant 0.000000e+00 : f32
    %1 = vector.broadcast %cst : f32 to vector<128x128xf32>
    %2 = vector.extract_strided_slice %0 {offsets = [0, 0, 0, 0], sizes = [2, 8, 8, 12], strides = [1, 1, 1, 1]} : vector<2x9x9x12xf32> to vector<2x8x8x12xf32>
    %3 = vector.shape_cast %2 : vector<2x8x8x12xf32> to vector<128x12xf32>
    %c0_3 = arith.constant 0 : index
    %c0_4 = arith.constant 0 : index
    %c0_5 = arith.constant 0 : index
    %4 = vector.load %arg1[%c0_3, %c0_4, %c0_5] : memref<4x12x128xf32, #tpu.memory_space<vmem>>, vector<1x12x128xf32>
    %5 = vector.shape_cast %4 : vector<1x12x128xf32> to vector<12x128xf32>
    %cst_6 = arith.constant dense<0.000000e+00> : vector<128x128xf32>
    %6 = tpu.matmul %3, %5, %cst_6 {dimension_numbers = #tpu.dot_dimension_numbers<[1], [0], [0], [1], [0, 0, 1, 1], [], []>} : vector<128x12xf32>, vector<12x128xf32>, vector<128x128xf32> -> vector<128x128xf32>
    %7 = arith.addf %1, %6 : vector<128x128xf32>
    %8 = vector.extract_strided_slice %0 {offsets = [0, 0, 1, 0], sizes = [2, 8, 8, 12], strides = [1, 1, 1, 1]} : vector<2x9x9x12xf32> to vector<2x8x8x12xf32>
    %9 = vector.shape_cast %8 : vector<2x8x8x12xf32> to vector<128x12xf32>
    %c1 = arith.constant 1 : index
    %c0_7 = arith.constant 0 : index
    %c0_8 = arith.constant 0 : index
    %10 = vector.load %arg1[%c1, %c0_7, %c0_8] : memref<4x12x128xf32, #tpu.memory_space<vmem>>, vector<1x12x128xf32>
    %11 = vector.shape_cast %10 : vector<1x12x128xf32> to vector<12x128xf32>
    %cst_9 = arith.constant dense<0.000000e+00> : vector<128x128xf32>
    %12 = tpu.matmul %9, %11, %cst_9 {dimension_numbers = #tpu.dot_dimension_numbers<[1], [0], [0], [1], [0, 0, 1, 1], [], []>} : vector<128x12xf32>, vector<12x128xf32>, vector<128x128xf32> -> vector<128x128xf32>
    %13 = arith.addf %7, %12 : vector<128x128xf32>
    %14 = vector.extract_strided_slice %0 {offsets = [0, 1, 0, 0], sizes = [2, 8, 8, 12], strides = [1, 1, 1, 1]} : vector<2x9x9x12xf32> to vector<2x8x8x12xf32>
    %15 = vector.shape_cast %14 : vector<2x8x8x12xf32> to vector<128x12xf32>
    %c2 = arith.constant 2 : index
    %c0_10 = arith.constant 0 : index
    %c0_11 = arith.constant 0 : index
    %16 = vector.load %arg1[%c2, %c0_10, %c0_11] : memref<4x12x128xf32, #tpu.memory_space<vmem>>, vector<1x12x128xf32>
    %17 = vector.shape_cast %16 : vector<1x12x128xf32> to vector<12x128xf32>
    %cst_12 = arith.constant dense<0.000000e+00> : vector<128x128xf32>
    %18 = tpu.matmul %15, %17, %cst_12 {dimension_numbers = #tpu.dot_dimension_numbers<[1], [0], [0], [1], [0, 0, 1, 1], [], []>} : vector<128x12xf32>, vector<12x128xf32>, vector<128x128xf32> -> vector<128x128xf32>
    %19 = arith.addf %13, %18 : vector<128x128xf32>
    %20 = vector.extract_strided_slice %0 {offsets = [0, 1, 1, 0], sizes = [2, 8, 8, 12], strides = [1, 1, 1, 1]} : vector<2x9x9x12xf32> to vector<2x8x8x12xf32>
    %21 = vector.shape_cast %20 : vector<2x8x8x12xf32> to vector<128x12xf32>
    %c3 = arith.constant 3 : index
    %c0_13 = arith.constant 0 : index
    %c0_14 = arith.constant 0 : index
    %22 = vector.load %arg1[%c3, %c0_13, %c0_14] : memref<4x12x128xf32, #tpu.memory_space<vmem>>, vector<1x12x128xf32>
    %23 = vector.shape_cast %22 : vector<1x12x128xf32> to vector<12x128xf32>
    %cst_15 = arith.constant dense<0.000000e+00> : vector<128x128xf32>
    %24 = tpu.matmul %21, %23, %cst_15 {dimension_numbers = #tpu.dot_dimension_numbers<[1], [0], [0], [1], [0, 0, 1, 1], [], []>} : vector<128x12xf32>, vector<12x128xf32>, vector<128x128xf32> -> vector<128x128xf32>
    %25 = arith.addf %19, %24 : vector<128x128xf32>
    %c0_16 = arith.constant 0 : index
    %c0_17 = arith.constant 0 : index
    %26 = vector.load %arg2[%c0_16, %c0_17] : memref<1x128xf32, #tpu.memory_space<vmem>>, vector<1x128xf32>
    %27 = vector.broadcast %26 : vector<1x128xf32> to vector<128x128xf32>
    %28 = arith.addf %25, %27 : vector<128x128xf32>
    %cst_18 = arith.constant 0.000000e+00 : f32
    %29 = vector.broadcast %cst_18 : f32 to vector<128x128xf32>
    %30 = arith.maximumf %28, %29 : vector<128x128xf32>
    %c0_19 = arith.constant 0 : index
    %c0_20 = arith.constant 0 : index
    %31 = vector.load %arg3[%c0_19, %c0_20] : memref<8x128xf32, #tpu.memory_space<vmem>>, vector<8x128xf32>
    %cst_21 = arith.constant dense<0.000000e+00> : vector<8x128xf32>
    %32 = tpu.matmul %31, %30, %cst_21 {dimension_numbers = #tpu.dot_dimension_numbers<[1], [0], [0], [1], [0, 0, 1, 1], [], []>} : vector<8x128xf32>, vector<128x128xf32>, vector<8x128xf32> -> vector<8x128xf32>
    %c0_22 = arith.constant 0 : index
    %c0_23 = arith.constant 0 : index
    %33 = vector.load %arg4[%c0_22, %c0_23] : memref<128x128xf32, #tpu.memory_space<vmem>>, vector<128x128xf32>
    %cst_24 = arith.constant dense<0.000000e+00> : vector<8x128xf32>
    %34 = tpu.matmul %32, %33, %cst_24 {dimension_numbers = #tpu.dot_dimension_numbers<[1], [0], [0], [1], [0, 0, 1, 1], [], []>} : vector<8x128xf32>, vector<128x128xf32>, vector<8x128xf32> -> vector<8x128xf32>
    %c0_25 = arith.constant 0 : index
    %c0_26 = arith.constant 0 : index
    %35 = vector.load %arg5[%c0_25, %c0_26] : memref<1x128xf32, #tpu.memory_space<vmem>>, vector<1x128xf32>
    %36 = vector.broadcast %35 : vector<1x128xf32> to vector<8x128xf32>
    %37 = arith.addf %34, %36 : vector<8x128xf32>
    %cst_27 = arith.constant 0.000000e+00 : f32
    %38 = vector.broadcast %cst_27 : f32 to vector<8x128xf32>
    %39 = arith.maximumf %37, %38 : vector<8x128xf32>
    %c0_28 = arith.constant 0 : index
    %c0_29 = arith.constant 0 : index
    %40 = vector.load %arg6[%c0_28, %c0_29] : memref<8x128xi32, #tpu.memory_space<vmem>>, vector<8x128xi32>
    %c-2147483648_i32 = arith.constant -2147483648 : i32
    %41 = vector.broadcast %c-2147483648_i32 : i32 to vector<8x128xi32>
    %42 = arith.cmpi ult, %40, %41 : vector<8x128xi32>
    %cst_30 = arith.constant 2.000000e+00 : f32
    %43 = vector.broadcast %cst_30 : f32 to vector<8x128xf32>
    %44 = arith.mulf %39, %43 : vector<8x128xf32>
    %cst_31 = arith.constant 0.000000e+00 : f32
    %45 = vector.broadcast %cst_31 : f32 to vector<8x128xf32>
    %46 = arith.select %42, %44, %45 : vector<8x128xi1>, vector<8x128xf32>
    %c0_32 = arith.constant 0 : index
    %c0_33 = arith.constant 0 : index
    %47 = vector.load %arg7[%c0_32, %c0_33] : memref<8x128xf32, #tpu.memory_space<vmem>>, vector<8x128xf32>
    tpu.vector_store %arg7[%c0_32, %c0_33], %46 {strides = array<i32>} : memref<8x128xf32, #tpu.memory_space<vmem>>, vector<8x128xf32>,
    return
  }
}

</mosaic_0001>

<bundles_post_ra>
// kernel: encoder_cnn_forward.1
= control target key start
LH: loop header
LB: loop body
LE: loop exit
PB: predicated region body
PF: predicated region fallthrough
CT: control target
= control target key end

     0   :  { %vm181_vm0 = vcmask 1043456   ;;  %vm148_vm1 = vcmask 97280   ;;  %vm96_vm2 = vcmask 1046528   ;;  %s1090_s1 = inlined_call_operand.vmem [shape: f32[4,12,128], index: 1, kind: input, shape index: {}]   ;;  %s1091_s0 = inlined_call_operand.vmem [shape: f32[2,9,9,12], index: 0, kind: input, shape index: {}]   ;;  %s1092_s2 = inlined_call_operand.vmem [shape: f32[1,128], index: 2, kind: input, shape index: {}]   ;;  %s1093_s4 = inlined_call_operand.vmem [shape: f32[128,128], index: 4, kind: input, shape index: {}]   ;;  %s1094_s3 = inlined_call_operand.vmem [shape: f32[8,128], index: 3, kind: input, shape index: {}]   ;;  %s1095_s5 = inlined_call_operand.vmem [shape: f32[1,128], index: 5, kind: input, shape index: {}]   ;;  %s1096_s6 = inlined_call_operand.vmem [shape: u32[8,128], index: 6, kind: input, shape index: {}]   ;;  %s1097_s7 = inlined_call_operand.vmem [shape: f32[8,128], index: 7, kind: output, shape index: {}]  }
   0x1   :  { %v688_v0 = vld [vmem:[%s1090_s1 + $0x28] sm:$0xf]  ;;  %v687_v1 = vld [vmem:[%s1090_s1 + $0x20] sm:$0xff]  ;;  %v707_v2 = vld [vmem:[%s1090_s1 + $0x38] sm:$0xf] }
   0x2   :  { %689 = vmatpush.msk.msra.mxu2 %vm181_vm0, %v688_v0  ;;  %708 = vmatpush.msk.msra.mxu3 %vm181_vm0, %v707_v2  ;;  %v28_v3 = vld [vmem:[%s1091_s0 + $0x10] sm:$0xff]  ;;  %v652_v4 = vld [vmem:[%s1090_s1 + $0x18] sm:$0xf]  ;;  %v63_v5 = vld [vmem:[%s1090_s1 + $0x8] sm:$0xf] }
   0x3   :  { %v100_v6 = vrot.slane %v28_v3, 1  ;;  %653 = vmatpush.msk.msra.mxu0 %vm181_vm0, %v652_v4  ;;  %670 = vmatpush.msk.msra.mxu1 %vm181_vm0, %v63_v5  ;;  %v706_v7 = vld [vmem:[%s1090_s1 + $0x30] sm:$0xff]  ;;  %v29_v8 = vld [vmem:[%s1091_s0 + $0x18] sm:$0x1]  ;;  %v62_v11 = vld [vmem:[%s1090_s1] sm:$0xff] }
   0x4   :  { %v651_v9 = vld [vmem:[%s1090_s1 + $0x10] sm:$0xff]  ;;  %377 = vmatpush.msra.mxu2 %v687_v1  ;;  %476 = vmatpush.msra.mxu3 %v706_v7  ;;  %v101_v10 = vrot.slane %v29_v8, 1  ;;  %v26_v12 = vld [vmem:[%s1091_s0] sm:$0xff]  ;;  %v27_v13 = vld [vmem:[%s1091_s0 + $0x8] sm:$0x1] }
   0x5   :  { %690 = vmatmul.msk.f32.vlgmr.msra.gmra.mxu2 %vm148_vm1, %v28_v3  ;;  %200 = vmatpush.msra.mxu0 %v651_v9  ;;  %v97_v14 = vrot.slane %v26_v12, 1  ;;  %v98_v15 = vrot.slane %v27_v13, 1  ;;  %v30_v16 = vld [vmem:[%s1091_s0 + $0x20] sm:$0xff]  ;;  %v31_v17 = vld [vmem:[%s1091_s0 + $0x28] sm:$0x1]  ;;  %v32_v23 = vld [vmem:[%s1091_s0 + $0x30] sm:$0xff] }
   0x6   :  { %v102_v18 = vsel %vm96_vm2, %v100_v6, %v101_v10  ;;  %300 = vmatpush.msra.mxu1 %v62_v11  ;;  %v103_v20 = vrot.slane %v30_v16, 1  ;;  %v104_v21 = vrot.slane %v31_v17, 1  ;;  %v33_v24 = vld [vmem:[%s1091_s0 + $0x38] sm:$0x1]  ;;  %v106_v25 = vrot.slane %v32_v23, 1  ;;  %v34_v28 = vld [vmem:[%s1091_s0 + $0x40] sm:$0xff] }
   0x7   :  { %709 = vmatmul.msk.f32.vlgmr.msra.gmra.mxu3 %vm148_vm1, %v102_v18  ;;  %v99_v19 = vsel %vm96_vm2, %v97_v14, %v98_v15  ;;  %671 = vmatmul.msk.f32.vlgmr.msra.gmra.mxu1 %vm148_vm1, %v26_v12  ;;  %v107_v26 = vrot.slane %v33_v24, 1  ;;  %v35_v29 = vld [vmem:[%s1091_s0 + $0x48] sm:$0x1]  ;;  %v109_v30 = vrot.slane %v34_v28, 1  ;;  %v36_v33 = vld [vmem:[%s1091_s0 + $0x50] sm:$0xff]  ;;  %v38_v38 = vld [vmem:[%s1091_s0 + $0x60] sm:$0xff] }
   0x8   :  { %654 = vmatmul.msk.f32.vlgmr.msra.gmra.mxu0 %vm148_vm1, %v99_v19  ;;  %v105_v22 = vsel %vm96_vm2, %v103_v20, %v104_v21  ;;  %v110_v31 = vrot.slane %v35_v29, 1  ;;  %v37_v34 = vld [vmem:[%s1091_s0 + $0x58] sm:$0x1]  ;;  %v112_v35 = vrot.slane %v36_v33, 1  ;;  %v39_v39 = vld [vmem:[%s1091_s0 + $0x68] sm:$0x1] }
   0x9   :  { %v108_v27 = vsel %vm96_vm2, %v106_v25, %v107_v26  ;;  %v113_v36 = vrot.slane %v37_v34, 1  ;;  %v115_v40 = vrot.slane %v38_v38, 1  ;;  %v116_v41 = vrot.slane %v39_v39, 1  ;;  %v40_v43 = vld [vmem:[%s1091_s0 + $0x70] sm:$0xff]  ;;  %v41_v44 = vld [vmem:[%s1091_s0 + $0x78] sm:$0x1] }
   0xa   :  { %v111_v32 = vsel %vm96_vm2, %v109_v30, %v110_v31  ;;  %v118_v45 = vrot.slane %v40_v43, 1  ;;  %v119_v46 = vrot.slane %v41_v44, 1  ;;  %v42_v48 = vld [vmem:[%s1091_s0 + $0x80] sm:$0xff]  ;;  %v43_v49 = vld [vmem:[%s1091_s0 + $0x88] sm:$0x1]  ;;  %v44_v55 = vld [vmem:[%s1091_s0 + $0x90] sm:$0xff] }
   0xb   :  { %v114_v37 = vsel %vm96_vm2, %v112_v35, %v113_v36  ;;  %v117_v42 = vsel %vm96_vm2, %v115_v40, %v116_v41  ;;  %v445_v50 = vrot.slane %v42_v48, 1  ;;  %v446_v51 = vrot.slane %v43_v49, 1  ;;  %v46_v53 = vld [vmem:[%s1091_s0 + $0xa0] sm:$0xff]  ;;  %v47_v54 = vld [vmem:[%s1091_s0 + $0xa8] sm:$0x1]  ;;  %v48_v63 = vld [vmem:[%s1091_s0 + $0xb0] sm:$0xff] }
   0xc   :  { %v120_v47 = vsel %vm96_vm2, %v118_v45, %v119_v46  ;;  %v45_v56 = vld [vmem:[%s1091_s0 + $0x98] sm:$0x1]  ;;  %v124_v57 = vrot.slane %v46_v53, 1  ;;  %v125_v58 = vrot.slane %v47_v54, 1  ;;  %v121_v59 = vrot.slane %v44_v55, 1  ;;  %v50_v4 = vld [vmem:[%s1091_s0 + $0xc0] sm:$0xff] }
   0xd   :  { %691 = vmatmul.msk.f32.gmra.mxu2 %vm148_vm1, %v30_v16  ;;  %v447_v52 = vsel %vm96_vm2, %v445_v50, %v446_v51  ;;  %v122_v60 = vrot.slane %v45_v56, 1  ;;  %v49_v0 = vld [vmem:[%s1091_s0 + $0xb8] sm:$0x1]  ;;  %v127_v1 = vrot.slane %v48_v63, 1  ;;  %v51_v5 = vld [vmem:[%s1091_s0 + $0xc8] sm:$0x1] }
   0xe   :  { %v126_v61 = vsel %vm96_vm2, %v124_v57, %v125_v58  ;;  %v128_v2 = vrot.slane %v49_v0, 1  ;;  %v130_v6 = vrot.slane %v50_v4, 1  ;;  %v131_v7 = vrot.slane %v51_v5, 1  ;;  %v52_v9 = vld [vmem:[%s1091_s0 + $0xd0] sm:$0xff]  ;;  %v53_v10 = vld [vmem:[%s1091_s0 + $0xd8] sm:$0x1] }
   0xf   :  { %710 = vmatmul.msk.f32.gmra.mxu3 %vm148_vm1, %v105_v22  ;;  %672 = vmatmul.msk.f32.gmra.mxu1 %vm148_vm1, %v28_v3  ;;  %v123_v62 = vsel %vm96_vm2, %v121_v59, %v122_v60  ;;  %v133_v11 = vrot.slane %v52_v9, 1  ;;  %v134_v12 = vrot.slane %v53_v10, 1  ;;  %v54_v14 = vld [vmem:[%s1091_s0 + $0xe0] sm:$0xff]  ;;  %v55_v15 = vld [vmem:[%s1091_s0 + $0xe8] sm:$0x1]  ;;  %v56_v19 = vld [vmem:[%s1091_s0 + $0xf0] sm:$0xff] }
  0x10   :  { %655 = vmatmul.msk.f32.gmra.mxu0 %vm148_vm1, %v102_v18  ;;  %v129_v3 = vsel %vm96_vm2, %v127_v1, %v128_v2  ;;  %v132_v8 = vsel %vm96_vm2, %v130_v6, %v131_v7  ;;  %v137_v17 = vrot.slane %v55_v15, 1  ;;  %v57_v20 = vld [vmem:[%s1091_s0 + $0xf8] sm:$0x1]  ;;  %v139_v21 = vrot.slane %v56_v19, 1  ;;  %v58_v24 = vld [vmem:[%s1091_s0 + $0x100] sm:$0xff]  ;;  %v60_v29 = vld [vmem:[%s1091_s0 + $0x110] sm:$0xff] }
  0x11   :  { %v135_v13 = vsel %vm96_vm2, %v133_v11, %v134_v12  ;;  %v59_v25 = vld [vmem:[%s1091_s0 + $0x108] sm:$0x1]  ;;  %v142_v26 = vrot.slane %v58_v24, 1  ;;  %v61_v30 = vld [vmem:[%s1091_s0 + $0x118] sm:$0x1]  ;;  %v448_v31 = vrot.slane %v60_v29, 1 }
  0x15   :  { %692 = vmatmul.msk.f32.gmra.mxu2 %vm148_vm1, %v32_v23 }
  0x17   :  { %711 = vmatmul.msk.f32.gmra.mxu3 %vm148_vm1, %v108_v27  ;;  %673 = vmatmul.msk.f32.gmra.mxu1 %vm148_vm1, %v30_v16  ;;  %v136_v16 = vrot.slane %v54_v14, 1 }
  0x18   :  { %656 = vmatmul.msk.f32.gmra.mxu0 %vm148_vm1, %v105_v22  ;;  %v140_v22 = vrot.slane %v57_v20, 1 }
  0x19   :  { %v138_v18 = vsel %vm96_vm2, %v136_v16, %v137_v17 }
  0x1d   :  { %693 = vmatmul.msk.f32.gmra.mxu2 %vm148_vm1, %v34_v28 }
  0x1f   :  { %712 = vmatmul.msk.f32.gmra.mxu3 %vm148_vm1, %v111_v32  ;;  %674 = vmatmul.msk.f32.gmra.mxu1 %vm148_vm1, %v32_v23  ;;  %v141_v23 = vsel %vm96_vm2, %v139_v21, %v140_v22 }
  0x20   :  { %657 = vmatmul.msk.f32.gmra.mxu0 %vm148_vm1, %v108_v27  ;;  %v143_v27 = vrot.slane %v59_v25, 1 }
  0x25   :  { %694 = vmatmul.msk.f32.gmra.mxu2 %vm148_vm1, %v36_v33 }
  0x27   :  { %713 = vmatmul.msk.f32.gmra.mxu3 %vm148_vm1, %v114_v37  ;;  %675 = vmatmul.msk.f32.gmra.mxu1 %vm148_vm1, %v34_v28  ;;  %v144_v28 = vsel %vm96_vm2, %v142_v26, %v143_v27 }
  0x28   :  { %658 = vmatmul.msk.f32.gmra.mxu0 %vm148_vm1, %v111_v32  ;;  %v449_v32 = vrot.slane %v61_v30, 1 }
  0x2d   :  { %695 = vmatmul.msk.f32.gmra.mxu2 %vm148_vm1, %v38_v38 }
  0x2f   :  { %714 = vmatmul.msk.f32.gmra.mxu3 %vm148_vm1, %v117_v42  ;;  %676 = vmatmul.msk.f32.gmra.mxu1 %vm148_vm1, %v36_v33  ;;  %v450_v33 = vsel %vm96_vm2, %v448_v31, %v449_v32 }
  0x30   :  { %659 = vmatmul.msk.f32.gmra.mxu0 %vm148_vm1, %v114_v37 }
  0x35   :  { %696 = vmatmul.msk.f32.gmra.mxu2 %vm148_vm1, %v40_v43 }
  0x37   :  { %715 = vmatmul.msk.f32.gmra.mxu3 %vm148_vm1, %v120_v47  ;;  %677 = vmatmul.msk.f32.gmra.mxu1 %vm148_vm1, %v38_v38 }
  0x38   :  { %660 = vmatmul.msk.f32.gmra.mxu0 %vm148_vm1, %v117_v42 }
  0x3d   :  { %697 = vmatmul.msk.f32.gmra.mxu2 %vm148_vm1, %v42_v48 }
  0x3f   :  { %716 = vmatmul.msk.f32.gmra.mxu3 %vm148_vm1, %v447_v52  ;;  %678 = vmatmul.msk.f32.gmra.mxu1 %vm148_vm1, %v40_v43 }
  0x40   :  { %661 = vmatmul.msk.f32.gmra.mxu0 %vm148_vm1, %v120_v47 }
  0x45   :  { %698 = vmatmul.msk.f32.gmra.mxu2 %vm148_vm1, %v46_v53 }
  0x47   :  { %717 = vmatmul.msk.f32.gmra.mxu3 %vm148_vm1, %v126_v61  ;;  %679 = vmatmul.msk.f32.gmra.mxu1 %vm148_vm1, %v44_v55 }
  0x48   :  { %662 = vmatmul.msk.f32.gmra.mxu0 %vm148_vm1, %v123_v62 }
  0x4d   :  { %699 = vmatmul.msk.f32.gmra.mxu2 %vm148_vm1, %v48_v63 }
  0x4f   :  { %718 = vmatmul.msk.f32.gmra.mxu3 %vm148_vm1, %v129_v3  ;;  %680 = vmatmul.msk.f32.gmra.mxu1 %vm148_vm1, %v46_v53 }
  0x50   :  { %663 = vmatmul.msk.f32.gmra.mxu0 %vm148_vm1, %v126_v61 }
  0x55   :  { %700 = vmatmul.msk.f32.gmra.mxu2 %vm148_vm1, %v50_v4 }
  0x57   :  { %719 = vmatmul.msk.f32.gmra.mxu3 %vm148_vm1, %v132_v8  ;;  %681 = vmatmul.msk.f32.gmra.mxu1 %vm148_vm1, %v48_v63 }
  0x58   :  { %664 = vmatmul.msk.f32.gmra.mxu0 %vm148_vm1, %v129_v3 }
  0x5d   :  { %701 = vmatmul.msk.f32.gmra.mxu2 %vm148_vm1, %v52_v9 }
  0x5f   :  { %720 = vmatmul.msk.f32.gmra.mxu3 %vm148_vm1, %v135_v13  ;;  %682 = vmatmul.msk.f32.gmra.mxu1 %vm148_vm1, %v50_v4 }
  0x60   :  { %665 = vmatmul.msk.f32.gmra.mxu0 %vm148_vm1, %v132_v8 }
  0x65   :  { %702 = vmatmul.msk.f32.gmra.mxu2 %vm148_vm1, %v54_v14 }
  0x67   :  { %721 = vmatmul.msk.f32.gmra.mxu3 %vm148_vm1, %v138_v18  ;;  %683 = vmatmul.msk.f32.gmra.mxu1 %vm148_vm1, %v52_v9 }
  0x68   :  { %666 = vmatmul.msk.f32.gmra.mxu0 %vm148_vm1, %v135_v13 }
  0x6d   :  { %703 = vmatmul.msk.f32.gmra.mxu2 %vm148_vm1, %v56_v19 }
  0x6f   :  { %722 = vmatmul.msk.f32.gmra.mxu3 %vm148_vm1, %v141_v23  ;;  %684 = vmatmul.msk.f32.gmra.mxu1 %vm148_vm1, %v54_v14 }
  0x70   :  { %667 = vmatmul.msk.f32.gmra.mxu0 %vm148_vm1, %v138_v18 }
  0x75   :  { %704 = vmatmul.msk.f32.gmra.mxu2 %vm148_vm1, %v58_v24 }
  0x77   :  { %723 = vmatmul.msk.f32.gmra.mxu3 %vm148_vm1, %v144_v28  ;;  %685 = vmatmul.msk.f32.gmra.mxu1 %vm148_vm1, %v56_v19 }
  0x78   :  { %668 = vmatmul.msk.f32.gmra.mxu0 %vm148_vm1, %v141_v23 }
  0x7d   :  { %705 = vmatmul.msk.f32.gmra.mxu2 %vm148_vm1, %v60_v29 }
  0x7f   :  { %724 = vmatmul.msk.f32.gmra.mxu3 %vm148_vm1, %v450_v33  ;;  %686 = vmatmul.msk.f32.gmra.mxu1 %vm148_vm1, %v58_v24 }
  0x80   :  { %669 = vmatmul.msk.f32.gmra.mxu0 %vm148_vm1, %v144_v28 }
  0x84   :  { %v302_v34 = vpop.f32.mrf.mxu1 }
  0x85   :  { %v202_v35 = vpop.f32.mrf.mxu0 }
  0x86   :  { %v303_v36 = vadd.f32 %v302_v34, %v202_v35 }
  0x88   :  { %v379_v37 = vpop.f32.mrf.mxu2 }
  0x89   :  { %v427_v38 = vadd.f32 %v379_v37, %v303_v36 }
  0x8a   :  { %v478_v39 = vpop.f32.mrf.mxu3 }
  0x8b   :  { %v982_v40 = vadd.f32 %v478_v39, %v427_v38 }
  0x8c   :  { %v305_v41 = vpop.f32.mrf.mxu1 }
  0x8d   :  { %v205_v42 = vpop.f32.mrf.mxu0 }
  0x8e   :  { %v306_v43 = vadd.f32 %v305_v41, %v205_v42 }
  0x90   :  { %v382_v44 = vpop.f32.mrf.mxu2 }
  0x91   :  { %v428_v45 = vadd.f32 %v382_v44, %v306_v43 }
  0x92   :  { %v481_v46 = vpop.f32.mrf.mxu3 }
  0x93   :  { %v984_v47 = vadd.f32 %v481_v46, %v428_v45 }
  0x94   :  { %v308_v48 = vpop.f32.mrf.mxu1 }
  0x95   :  { %v208_v49 = vpop.f32.mrf.mxu0 }
  0x96   :  { %v309_v50 = vadd.f32 %v308_v48, %v208_v49 }
  0x98   :  { %v385_v51 = vpop.f32.mrf.mxu2 }
  0x99   :  { %v429_v52 = vadd.f32 %v385_v51, %v309_v50 }
  0x9a   :  { %v484_v53 = vpop.f32.mrf.mxu3 }
  0x9b   :  { %v986_v54 = vadd.f32 %v484_v53, %v429_v52 }
  0x9c   :  { %v311_v55 = vpop.f32.mrf.mxu1 }
  0x9d   :  { %v211_v56 = vpop.f32.mrf.mxu0 }
  0x9e   :  { %v312_v57 = vadd.f32 %v311_v55, %v211_v56 }
  0xa0   :  { %v388_v58 = vpop.f32.mrf.mxu2 }
  0xa1   :  { %v430_v59 = vadd.f32 %v388_v58, %v312_v57 }
  0xa2   :  { %v487_v60 = vpop.f32.mrf.mxu3 }
  0xa3   :  { %v988_v61 = vadd.f32 %v487_v60, %v430_v59 }
  0xa4   :  { %v314_v62 = vpop.f32.mrf.mxu1 }
  0xa5   :  { %v214_v63 = vpop.f32.mrf.mxu0 }
  0xa6   :  { %v315_v0 = vadd.f32 %v314_v62, %v214_v63 }
  0xa8   :  { %v391_v1 = vpop.f32.mrf.mxu2 }
  0xa9   :  { %v431_v2 = vadd.f32 %v391_v1, %v315_v0 }
  0xaa   :  { %v490_v3 = vpop.f32.mrf.mxu3 }
  0xab   :  { %v990_v4 = vadd.f32 %v490_v3, %v431_v2 }
  0xac   :  { %v317_v5 = vpop.f32.mrf.mxu1 }
  0xad   :  { %v217_v6 = vpop.f32.mrf.mxu0 }
  0xae   :  { %v318_v7 = vadd.f32 %v317_v5, %v217_v6 }
  0xb0   :  { %v394_v8 = vpop.f32.mrf.mxu2 }
  0xb1   :  { %v432_v9 = vadd.f32 %v394_v8, %v318_v7 }
  0xb2   :  { %v493_v10 = vpop.f32.mrf.mxu3 }
  0xb3   :  { %v992_v11 = vadd.f32 %v493_v10, %v432_v9 }
  0xb4   :  { %v320_v12 = vpop.f32.mrf.mxu1 }
  0xb5   :  { %v220_v13 = vpop.f32.mrf.mxu0 }
  0xb6   :  { %v321_v14 = vadd.f32 %v320_v12, %v220_v13 }
  0xb8   :  { %v397_v15 = vpop.f32.mrf.mxu2 }
  0xb9   :  { %v433_v16 = vadd.f32 %v397_v15, %v321_v14 }
  0xba   :  { %v496_v17 = vpop.f32.mrf.mxu3 }
  0xbb   :  { %v994_v18 = vadd.f32 %v496_v17, %v433_v16 }
  0xbc   :  { %v323_v19 = vpop.f32.mrf.mxu1 }
  0xbd   :  { %v223_v20 = vpop.f32.mrf.mxu0 }
  0xbe   :  { %v324_v21 = vadd.f32 %v323_v19, %v223_v20  ;;  %v1003_v19 = vld [vmem:[%s1092_s2] ss:$0 sm:$0xff] }
  0xc0   :  { %v400_v22 = vpop.f32.mrf.mxu2 }
  0xc1   :  { %v434_v23 = vadd.f32 %v400_v22, %v324_v21 }
  0xc2   :  { %v499_v24 = vpop.f32.mrf.mxu3 }
  0xc3   :  { %v996_v25 = vadd.f32 %v499_v24, %v434_v23 }
  0xc4   :  { %v326_v26 = vpop.f32.mrf.mxu1 }
  0xc5   :  { %v226_v27 = vpop.f32.mrf.mxu0 }
  0xc6   :  { %v327_v28 = vadd.f32 %v326_v26, %v226_v27 }
  0xc8   :  { %v403_v29 = vpop.f32.mrf.mxu2 }
  0xc9   :  { %v435_v30 = vadd.f32 %v403_v29, %v327_v28  ;;  %v614_v29 = vld [vmem:[%s1093_s4 + $0x78] sm:$0xff] }
  0xca   :  { %v502_v31 = vpop.f32.mrf.mxu3  ;;  %619 = vmatpush.msrb.mxu1 %v614_v29 }
  0xcb   :  { %v998_v32 = vadd.f32 %v502_v31, %v435_v30  ;;  %v613_v30 = vld [vmem:[%s1093_s4 + $0x70] sm:$0xff] }
  0xcc   :  { %v329_v33 = vpop.f32.mrf.mxu1  ;;  %620 = vmatpush.msrb.mxu1 %v613_v30 }
  0xcd   :  { %v229_v34 = vpop.f32.mrf.mxu0 }
  0xce   :  { %v330_v14 = vadd.f32 %v329_v33, %v229_v34 }
  0xd0   :  { %v406_v35 = vpop.f32.mrf.mxu2 }
  0xd1   :  { %v436_v24 = vadd.f32 %v406_v35, %v330_v14  ;;  %v612_v35 = vld [vmem:[%s1093_s4 + $0x68] sm:$0xff] }
  0xd2   :  { %v505_v36 = vpop.f32.mrf.mxu3  ;;  %621 = vmatpush.msrb.mxu1 %v612_v35 }
  0xd4   :  { %v332_v37 = vpop.f32.mrf.mxu1 }
  0xd5   :  { %v232_v38 = vpop.f32.mrf.mxu0 }
  0xd6   :  { %v333_v8 = vadd.f32 %v332_v37, %v232_v38  ;;  %v535_v37 = vadd.f32 %v505_v36, %v436_v24 }
  0xd8   :  { %v409_v39 = vpop.f32.mrf.mxu2 }
  0xd9   :  { %v437_v20 = vadd.f32 %v409_v39, %v333_v8 }
  0xda   :  { %v508_v41 = vpop.f32.mrf.mxu3 }
  0xdb   :  { %v536_v31 = vadd.f32 %v508_v41, %v437_v20 }
  0xdc   :  { %v335_v42 = vpop.f32.mrf.mxu1 }
  0xdd   :  { %v235_v43 = vpop.f32.mrf.mxu0 }
  0xde   :  { %v336_v5 = vadd.f32 %v335_v42, %v235_v43  ;;  %v611_v42 = vld [vmem:[%s1093_s4 + $0x60] sm:$0xff]  ;;  %v556_v43 = vadd.f32 %v1003_v19, %v536_v31 }
  0xdf   :  { %622 = vmatpush.msrb.mxu1 %v611_v42 }
  0xe0   :  { %v412_v44 = vpop.f32.mrf.mxu2 }
  0xe1   :  { %v438_v15 = vadd.f32 %v412_v44, %v336_v5  ;;  %v610_v44 = vld [vmem:[%s1093_s4 + $0x58] sm:$0xff] }
  0xe2   :  { %v511_v45 = vpop.f32.mrf.mxu3  ;;  %623 = vmatpush.msrb.mxu1 %v610_v44 }
  0xe3   :  { %v537_v26 = vadd.f32 %v511_v45, %v438_v15  ;;  %v555_v45 = vadd.f32 %v1003_v19, %v535_v37 }
  0xe4   :  { %v338_v46 = vpop.f32.mrf.mxu1 }
  0xe5   :  { %v238_v48 = vpop.f32.mrf.mxu0  ;;  %v557_v39 = vadd.f32 %v1003_v19, %v537_v26 }
  0xe6   :  { %v339_v0 = vadd.f32 %v338_v46, %v238_v48  ;;  %v609_v46 = vld [vmem:[%s1093_s4 + $0x50] sm:$0xff]  ;;  %v572_v48 = vmax.f32 %v556_v43, 0.0 }
  0xe7   :  { %v573_v36 = vmax.f32 %v557_v39, 0.0  ;;  %624 = vmatpush.msrb.mxu1 %v609_v46 }
  0xe8   :  { %v415_v49 = vpop.f32.mrf.mxu2 }
  0xe9   :  { %v439_v9 = vadd.f32 %v415_v49, %v339_v0  ;;  %v554_v49 = vadd.f32 %v1003_v19, %v998_v32  ;;  %v552_v32 = vadd.f32 %v1003_v19, %v994_v18  ;;  %v550_v18 = vadd.f32 %v1003_v19, %v990_v4 }
  0xea   :  { %v514_v50 = vpop.f32.mrf.mxu3  ;;  %v548_v4 = vadd.f32 %v1003_v19, %v986_v54  ;;  %v546_v54 = vadd.f32 %v1003_v19, %v982_v40 }
  0xeb   :  { %v538_v21 = vadd.f32 %v514_v50, %v439_v9  ;;  %v608_v50 = vld [vmem:[%s1093_s4 + $0x48] sm:$0xff]  ;;  %v566_v0 = vmax.f32 %v550_v18, 0.0  ;;  %v578_v9 = vld [vmem:[%s1094_s3] sm:$0xff] }
  0xec   :  { %v341_v51 = vpop.f32.mrf.mxu1  ;;  %625 = vmatpush.msrb.mxu1 %v608_v50  ;;  %v564_v5 = vmax.f32 %v548_v4, 0.0  ;;  %v562_v8 = vmax.f32 %v546_v54, 0.0 }
  0xed   :  { %v241_v52 = vpop.f32.mrf.mxu0  ;;  %v558_v34 = vadd.f32 %v1003_v19, %v538_v21 }
  0xee   :  { %v342_v62 = vadd.f32 %v341_v51, %v241_v52  ;;  %v571_v51 = vmax.f32 %v555_v45, 0.0  ;;  %v553_v52 = vadd.f32 %v1003_v19, %v996_v25  ;;  %v551_v25 = vadd.f32 %v1003_v19, %v992_v11 }
  0xef   :  { %v574_v41 = vmax.f32 %v558_v34, 0.0  ;;  %v549_v11 = vadd.f32 %v1003_v19, %v988_v61  ;;  %v547_v61 = vadd.f32 %v1003_v19, %v984_v47  ;;  %v599_v47 = vld [vmem:[%s1093_s4] sm:$0xff] }
  0xf0   :  { %v418_v53 = vpop.f32.mrf.mxu2 }
  0xf1   :  { %v440_v6 = vadd.f32 %v418_v53, %v342_v62  ;;  %v607_v53 = vld [vmem:[%s1093_s4 + $0x40] sm:$0xff]  ;;  %v567_v62 = vmax.f32 %v551_v25, 0.0 }
  0xf2   :  { %v517_v55 = vpop.f32.mrf.mxu3  ;;  %626 = vmatpush.msrb.mxu1 %v607_v53 }
  0xf3   :  { %v539_v16 = vadd.f32 %v517_v55, %v440_v6  ;;  %v570_v55 = vmax.f32 %v554_v49, 0.0  ;;  %v600_v6 = vld [vmem:[%s1093_s4 + $0x8] sm:$0xff] }
  0xf4   :  { %v344_v56 = vpop.f32.mrf.mxu1 }
  0xf5   :  { %v244_v57 = vpop.f32.mrf.mxu0  ;;  %v559_v28 = vadd.f32 %v1003_v19, %v539_v16 }
  0xf6   :  { %v345_v59 = vadd.f32 %v344_v56, %v244_v57  ;;  %v606_v56 = vld [vmem:[%s1093_s4 + $0x38] sm:$0xff]  ;;  %v569_v57 = vmax.f32 %v553_v52, 0.0 }
  0xf7   :  { %v575_v38 = vmax.f32 %v559_v28, 0.0  ;;  %627 = vmatpush.msrb.mxu1 %v606_v56 }
  0xf8   :  { %v421_v58 = vpop.f32.mrf.mxu2 }
  0xf9   :  { %v441_v1 = vadd.f32 %v421_v58, %v345_v59  ;;  %v605_v58 = vld [vmem:[%s1093_s4 + $0x30] sm:$0xff]  ;;  %v568_v59 = vmax.f32 %v552_v32, 0.0 }
  0xfa   :  { %v520_v60 = vpop.f32.mrf.mxu3  ;;  %628 = vmatpush.msrb.mxu1 %v605_v58 }
  0xfb   :  { %v540_v10 = vadd.f32 %v520_v60, %v441_v1  ;;  %v604_v60 = vld [vmem:[%s1093_s4 + $0x28] sm:$0xff]  ;;  %v602_v1 = vld [vmem:[%s1093_s4 + $0x18] sm:$0xff] }
  0xfc   :  { %v347_v63 = vpop.f32.mrf.mxu1  ;;  %629 = vmatpush.msrb.mxu1 %v604_v60 }
  0xfd   :  { %v247_v2 = vpop.f32.mrf.mxu0  ;;  %v560_v23 = vadd.f32 %v1003_v19, %v540_v10  ;;  %v727_v10 = vld [vmem:[%s1095_s5] ss:$0 sm:$0xff] }
  0xfe   :  { %v348_v3 = vadd.f32 %v347_v63, %v247_v2  ;;  %v603_v63 = vld [vmem:[%s1093_s4 + $0x20] sm:$0xff]  ;;  %v565_v2 = vmax.f32 %v549_v11, 0.0 }
  0xff   :  { %v576_v33 = vmax.f32 %v560_v23, 0.0  ;;  %630 = vmatpush.msrb.mxu1 %v603_v63 }
 0x100   :  { %v424_v7 = vpop.f32.mrf.mxu2 }
 0x101   :  { %v442_v12 = vadd.f32 %v424_v7, %v348_v3  ;;  %v601_v3 = vld [vmem:[%s1093_s4 + $0x10] sm:$0xff]  ;;  %631 = vmatpush.msrb.mxu1 %v602_v1  ;;  %v563_v7 = vmax.f32 %v547_v61, 0.0 }
 0x102   :  { %v523_v13 = vpop.f32.mrf.mxu3 }
 0x103   :  { %v541_v17 = vadd.f32 %v523_v13, %v442_v12  ;;  %632 = vmatpush.msrb.mxu1 %v601_v3  ;;  %v640_v12 = vld [vmem:[%s1096_s6] sm:$0xff] }
 0x104   :  { %v725_v14 = vxor.u32 2147483648, %v640_v12 }
 0x105   :  { %v561_v22 = vadd.f32 %v1003_v19, %v541_v17  ;;  %633 = vmatpush.msrb.mxu1 %v600_v6 }
 0x106   :  { %vm643_vm3 = vcmp.lt.s32.totalorder %v725_v14, 0 }
 0x107   :  { %v577_v27 = vmax.f32 %v561_v22, 0.0  ;;  %634 = vmatpush.msrb.mxu1 %v599_v47 }
 0x109   :  { %579 = vmatpush.msrb.mxu0 %v577_v27 }
 0x10b   :  { %580 = vmatpush.msrb.mxu0 %v576_v33 }
 0x10d   :  { %581 = vmatpush.msrb.mxu0 %v575_v38 }
 0x10f   :  { %582 = vmatpush.msrb.mxu0 %v574_v41 }
 0x111   :  { %583 = vmatpush.msrb.mxu0 %v573_v36 }
 0x113   :  { %584 = vmatpush.msrb.mxu0 %v572_v48 }
 0x115   :  { %585 = vmatpush.msrb.mxu0 %v571_v51 }
 0x117   :  { %586 = vmatpush.msrb.mxu0 %v570_v55 }
 0x119   :  { %587 = vmatpush.msrb.mxu0 %v569_v57 }
 0x11b   :  { %588 = vmatpush.msrb.mxu0 %v568_v59 }
 0x11d   :  { %589 = vmatpush.msrb.mxu0 %v567_v62 }
 0x11f   :  { %590 = vmatpush.msrb.mxu0 %v566_v0 }
 0x121   :  { %591 = vmatpush.msrb.mxu0 %v565_v2 }
 0x123   :  { %592 = vmatpush.msrb.mxu0 %v564_v5 }
 0x125   :  { %593 = vmatpush.msrb.mxu0 %v563_v7 }
 0x127   :  { %594 = vmatpush.msrb.mxu0 %v562_v8 }
 0x128   :  { %595 = vmatmul.f32.vlgmr.msrb.gmra.mxu0 %v578_v9 }
 0x1a5   :  { %v596_v40 = vpop.f32.mrf.mxu0 }
 0x1a6   :  { %635 = vmatmul.f32.vlgmr.msrb.gmra.mxu1 %v596_v40 }
 0x223   :  { %v636_v13 = vpop.f32.mrf.mxu1 }
 0x224   :  { %v637_v15 = vadd.f32 %v727_v10, %v636_v13 }
 0x226   :  { %v639_v16 = vmax.f32 %v637_v15, 0.0 }
 0x228   :  { %v644_v17 = vmul.f32 2.0, %v639_v16 }
 0x22a   :  { %v645_v19 = vsel %vm643_vm3, %v644_v17, 0.0 }
 0x22b   :  { %646 = vst [vmem:[%s1097_s7] sm:$0xff] %v645_v19 }

</bundles_post_ra>
